<compile_context>
chip_gen: v7x
topology: tpu7x:2x2x1
jax: 0.10.0
libtpu: 0.0.40
codegen_flags: <defaults>
</compile_context>

<pallas_src>
import functools

import jax
import jax.numpy as jnp
from jax import lax
from jax.experimental import pallas as pl
from jax.experimental.pallas import tpu as pltpu

NEG_SLOPE = 0.01  # PyTorch nn.LeakyReLU default negative_slope


def _leaky(x):
    return jnp.where(x > 0, x, NEG_SLOPE * x)


def _depth_conv_block_kernel(x_ref, w1_ref, b1_ref, wd_ref, bd_ref,
                             w2_ref, b2_ref, wf1_ref, bf1_ref, wf2_ref, bf2_ref,
                             o_ref, ypad_ref, *, has_adaptor, img_w, pad):
    x = x_ref[...]                          # (Cin, H*W) for the current image
    cin, n = x.shape
    w = img_w

    # ---- DepthConv.conv1 (+ fused residual adaptor): one MXU matmul ----
    t = jnp.dot(w1_ref[...], x, preferred_element_type=jnp.float32) + b1_ref[...]
    if has_adaptor:
        y = _leaky(t[:cin, :])              # conv1 rows -> LeakyReLU
        ident = t[cin:, :]                  # adaptor rows -> linear (no act)
    else:
        y = _leaky(t)
        ident = x                           # adaptor=None -> exact passthrough

    # ---- DepthConv.depth_conv: 3x3 depthwise conv (padding=1, groups=C) ----
    # Zero guard bands are rewritten every step (cheap): the scratch is
    # per-core and the batch axis is "parallel", so a program_id==0 guard
    # would not be core-safe on megacore parts.
    zeros_pad = jnp.zeros((cin, pad), jnp.float32)
    ypad_ref[:, 0:pad] = zeros_pad
    ypad_ref[:, pad + n: pad + n + pad] = zeros_pad
    ypad_ref[:, pad: pad + n] = y           # lane-aligned store (pad % 128 == 0)

    wd = wd_ref[...]                        # (Cin, 9), col k = (dy+1)*3 + (dx+1)

    def tap(off):                           # static lane-offset slice of padded y
        return ypad_ref[:, pad + off: pad + off + n]

    # dx == 0 column: row under/overflow lands in the zero guard bands -> no mask.
    acc = y * wd[:, 4:5]                    # center tap (dy=0, dx=0)
    acc = acc + tap(-w) * wd[:, 1:2]        # (dy=-1, dx=0)
    acc = acc + tap(w) * wd[:, 7:8]         # (dy=+1, dx=0)

    # dx == ±1 columns: only the column wrap at image edges needs masking.
    # One shared edge mask per 3-tap group (a single select, not per-tap muls).
    col = lax.broadcasted_iota(jnp.int32, (cin, n), 1) % w
    left = (tap(-w - 1) * wd[:, 0:1]        # (dy=-1, dx=-1)
            + tap(-1) * wd[:, 3:4]          # (dy= 0, dx=-1)
            + tap(w - 1) * wd[:, 6:7])      # (dy=+1, dx=-1)
    acc = acc + jnp.where(col != 0, left, 0.0)
    right = (tap(-w + 1) * wd[:, 2:3]       # (dy=-1, dx=+1)
             + tap(1) * wd[:, 5:6]          # (dy= 0, dx=+1)
             + tap(w + 1) * wd[:, 8:9])     # (dy=+1, dx=+1)
    acc = acc + jnp.where(col != w - 1, right, 0.0)

    d = _leaky(acc + bd_ref[...])

    # ---- DepthConv.conv2 + residual ----
    z = _leaky(jnp.dot(w2_ref[...], d, preferred_element_type=jnp.float32)
               + b2_ref[...])
    z = z + ident

    # ---- ConvFFN: 1x1 -> ReLU -> 1x1 -> ReLU, with residual ----
    h = jnp.maximum(jnp.dot(wf1_ref[...], z, preferred_element_type=jnp.float32)
                    + bf1_ref[...], 0.0)
    h = jnp.maximum(jnp.dot(wf2_ref[...], h, preferred_element_type=jnp.float32)
                    + bf2_ref[...], 0.0)

    o_ref[...] = z + h                      # (Cout, H*W): lane-dense, unmasked store


def depth_conv_block(x_nchw, params):
    """x_nchw: (B, Cin, H, W) float32 (PyTorch layout). Returns (B, Cout, H, W)."""
    B, Cin, H, W = x_nchw.shape
    Cout = params["w2"].shape[0]
    HW = H * W
    has_adaptor = "wa" in params

    # Free, contiguous reshape of NCHW -> (B, Cin, H*W); no transposes.
    x = x_nchw.reshape(B, Cin, HW)

    # Fuse conv1 + adaptor weights into a single ((Cin+Cout), Cin) matmul operand.
    if has_adaptor:
        w1 = jnp.concatenate([params["w1"], params["wa"]], axis=0)
        b1 = jnp.concatenate([params["b1"], params["ba"]], axis=0)
    else:
        w1, b1 = params["w1"], params["b1"]

    weights = [w1, b1, params["wd"], params["bd"], params["w2"], params["b2"],
               params["wf1"], params["bf1"], params["wf2"], params["bf2"]]

    pad = -(-(W + 1) // 128) * 128          # >= W+1, lane-aligned guard band

    mid = params["wf1"].shape[0]
    flops = 2 * B * HW * (w1.shape[0] * Cin + 9 * Cin + Cout * Cin
                          + mid * Cout + Cout * mid)
    bytes_accessed = 4 * (B * Cin * HW + B * Cout * HW
                          + sum(int(a.size) for a in weights))

    kernel = functools.partial(_depth_conv_block_kernel,
                               has_adaptor=has_adaptor, img_w=W, pad=pad)

    # Weights: whole-array blocks with constant index maps -> fetched once.
    w_specs = [pl.BlockSpec(wt.shape, lambda b: (0, 0)) for wt in weights]

    out = pl.pallas_call(
        kernel,
        out_shape=jax.ShapeDtypeStruct((B, Cout, HW), jnp.float32),
        grid=(B,),
        in_specs=[pl.BlockSpec((None, Cin, HW), lambda b: (b, 0, 0))] + w_specs,
        out_specs=pl.BlockSpec((None, Cout, HW), lambda b: (b, 0, 0)),
        scratch_shapes=[pltpu.VMEM((Cin, HW + 2 * pad), jnp.float32)],
        compiler_params=pltpu.CompilerParams(
            dimension_semantics=("parallel",),          # 2 TCs on v7x
            vmem_limit_bytes=32 * 1024 * 1024),          # raise v5e's 16 MiB default; < v7x 64 MiB
        cost_estimate=pl.CostEstimate(flops=flops, transcendentals=0,
                                      bytes_accessed=bytes_accessed),
    )(x, *weights)

    # Free reshape back to NCHW.
    return out.reshape(B, Cout, H, W)


def init_params(key, in_ch, out_ch):
    """Deterministic synthetic params (channels-first matrix convention)."""
    ks = jax.random.split(key, 12)
    mid = out_ch * 4

    def w(k, shape, scale):
        return jax.random.normal(k, shape, jnp.float32) * scale

    params = {
        "w1":  w(ks[0], (in_ch, in_ch), 0.3),    # conv1 1x1:  (Cin -> Cin), (O, I)
        "b1":  w(ks[1], (in_ch, 1), 0.1),
        "wd":  w(ks[2], (in_ch, 9), 0.3),        # depthwise 3x3: (C, 9), col k = i*3+j
        "bd":  w(ks[3], (in_ch, 1), 0.1),
        "w2":  w(ks[4], (out_ch, in_ch), 0.3),   # conv2 1x1:  (Cin -> Cout)
        "b2":  w(ks[5], (out_ch, 1), 0.1),
        "wf1": w(ks[6], (mid, out_ch), 0.2),     # FFN 1x1:    (Cout -> 4*Cout)
        "bf1": w(ks[7], (mid, 1), 0.1),
        "wf2": w(ks[8], (out_ch, mid), 0.2),     # FFN 1x1:    (4*Cout -> Cout)
        "bf2": w(ks[9], (out_ch, 1), 0.1),
    }
    if in_ch != out_ch:
        params["wa"] = w(ks[10], (out_ch, in_ch), 0.3)   # adaptor 1x1
        params["ba"] = w(ks[11], (out_ch, 1), 0.1)
    return params


def ref_forward(x_nchw, params):
    """Pure-JAX reference using lax.conv_general_dilated (NCHW, like PyTorch)."""
    def conv1x1(x, wmat, b):  # wmat: (Cout, Cin)
        w4 = wmat[:, :, None, None]
        y = lax.conv_general_dilated(x, w4, (1, 1), "VALID",
                                     dimension_numbers=("NCHW", "OIHW", "NCHW"))
        return y + b.reshape(1, -1, 1, 1)

    def dwconv(x, wd, b):  # wd: (C, 9)
        C = x.shape[1]
        w4 = wd.reshape(C, 1, 3, 3)
        y = lax.conv_general_dilated(x, w4, (1, 1), ((1, 1), (1, 1)),
                                     dimension_numbers=("NCHW", "OIHW", "NCHW"),
                                     feature_group_count=C)
        return y + b.reshape(1, -1, 1, 1)

    leaky = lambda v: jnp.where(v > 0, v, NEG_SLOPE * v)
    relu = lambda v: jnp.maximum(v, 0.0)

    ident = conv1x1(x_nchw, params["wa"], params["ba"]) if "wa" in params else x_nchw
    y = leaky(conv1x1(x_nchw, params["w1"], params["b1"]))
    y = leaky(dwconv(y, params["wd"], params["bd"]))
    y = leaky(conv1x1(y, params["w2"], params["b2"]))
    z = y + ident
    h = relu(conv1x1(z, params["wf1"], params["bf1"]))
    h = relu(conv1x1(h, params["wf2"], params["bf2"]))
    return z + h


if __name__ == "__main__":
    key = jax.random.PRNGKey(0)
    kx1, kp1, kx2, kp2 = jax.random.split(key, 4)

    # Case 1: in_ch != out_ch (adaptor 1x1 conv fused into conv1's matmul).
    B, IN_CH, OUT_CH, H, W = 2, 4, 8, 16, 16
    x1 = jax.random.normal(kx1, (B, IN_CH, H, W), jnp.float32)
    p1 = init_params(kp1, IN_CH, OUT_CH)
    out1 = jax.block_until_ready(depth_conv_block(x1, p1))
    ref1 = jax.block_until_ready(ref_forward(x1, p1))
    assert out1.shape == (B, OUT_CH, H, W), out1.shape
    assert jnp.allclose(out1, ref1, atol=2e-4, rtol=2e-4), \
        float(jnp.max(jnp.abs(out1 - ref1)))

    # Case 2: in_ch == out_ch (adaptor=None -> direct residual add, no extra matmul).
    x2 = jax.random.normal(kx2, (B, OUT_CH, H, W), jnp.float32)
    p2 = init_params(kp2, OUT_CH, OUT_CH)
    out2 = jax.block_until_ready(depth_conv_block(x2, p2))
    ref2 = jax.block_until_ready(ref_forward(x2, p2))
    assert out2.shape == (B, OUT_CH, H, W), out2.shape
    assert jnp.allclose(out2, ref2, atol=2e-4, rtol=2e-4), \
        float(jnp.max(jnp.abs(out2 - ref2)))

    print("KERNEL_OK")
</pallas_src>

<mosaic_0001>
module attributes {stable_mosaic.version = 11 : i64} {
  func.func @_depth_conv_block_kernel(%arg0: i32, %arg1: memref<1x4x256xf32, #tpu.memory_space<vmem>>, %arg2: memref<12x4xf32, #tpu.memory_space<vmem>>, %arg3: memref<12x1xf32, #tpu.memory_space<vmem>>, %arg4: memref<4x9xf32, #tpu.memory_space<vmem>>, %arg5: memref<4x1xf32, #tpu.memory_space<vmem>>, %arg6: memref<8x4xf32, #tpu.memory_space<vmem>>, %arg7: memref<8x1xf32, #tpu.memory_space<vmem>>, %arg8: memref<32x8xf32, #tpu.memory_space<vmem>>, %arg9: memref<32x1xf32, #tpu.memory_space<vmem>>, %arg10: memref<8x32xf32, #tpu.memory_space<vmem>>, %arg11: memref<8x1xf32, #tpu.memory_space<vmem>>, %arg12: memref<1x8x256xf32, #tpu.memory_space<vmem>>, %arg13: memref<4x512xf32, #tpu.memory_space<vmem>>) attributes {dimension_semantics = [#tpu.dimension_semantics<parallel>], iteration_bounds = array<i64: 2>, scalar_prefetch = 0 : i64, scratch_operands = 1 : i64, tpu.core_type = #tpu.core_type<tc>, window_params = [{transform_indices = @transform_0, window_bounds = array<i64: 1, 4, 256>}, {pipeline_mode = #tpu.pipeline_mode<synchronous>, transform_indices = @transform_1, window_bounds = array<i64: 12, 4>}, {pipeline_mode = #tpu.pipeline_mode<synchronous>, transform_indices = @transform_2, window_bounds = array<i64: 12, 1>}, {pipeline_mode = #tpu.pipeline_mode<synchronous>, transform_indices = @transform_3, window_bounds = array<i64: 4, 9>}, {pipeline_mode = #tpu.pipeline_mode<synchronous>, transform_indices = @transform_4, window_bounds = array<i64: 4, 1>}, {pipeline_mode = #tpu.pipeline_mode<synchronous>, transform_indices = @transform_5, window_bounds = array<i64: 8, 4>}, {pipeline_mode = #tpu.pipeline_mode<synchronous>, transform_indices = @transform_6, window_bounds = array<i64: 8, 1>}, {pipeline_mode = #tpu.pipeline_mode<synchronous>, transform_indices = @transform_7, window_bounds = array<i64: 32, 8>}, {pipeline_mode = #tpu.pipeline_mode<synchronous>, transform_indices = @transform_8, window_bounds = array<i64: 32, 1>}, {pipeline_mode = #tpu.pipeline_mode<synchronous>, transform_indices = @transform_9, window_bounds = array<i64: 8, 32>}, {pipeline_mode = #tpu.pipeline_mode<synchronous>, transform_indices = @transform_10, window_bounds = array<i64: 8, 1>}, {transform_indices = @transform_11, window_bounds = array<i64: 1, 8, 256>}]} {
    %c0 = arith.constant 0 : index
    %c0_0 = arith.constant 0 : index
    %c0_1 = arith.constant 0 : index
    %0 = vector.load %arg1[%c0, %c0_0, %c0_1] : memref<1x4x256xf32, #tpu.memory_space<vmem>>, vector<1x4x256xf32>
    %1 = vector.shape_cast %0 : vector<1x4x256xf32> to vector<4x256xf32>
    %c0_2 = arith.constant 0 : index
    %c0_3 = arith.constant 0 : index
    %2 = vector.load %arg2[%c0_2, %c0_3] : memref<12x4xf32, #tpu.memory_space<vmem>>, vector<12x4xf32>
    %cst = arith.constant dense<0.000000e+00> : vector<12x256xf32>
    %3 = tpu.matmul %2, %1, %cst {dimension_numbers = #tpu.dot_dimension_numbers<[1], [0], [0], [1], [0, 0, 1, 1], [], []>} : vector<12x4xf32>, vector<4x256xf32>, vector<12x256xf32> -> vector<12x256xf32>
    %c0_4 = arith.constant 0 : index
    %c0_5 = arith.constant 0 : index
    %4 = vector.load %arg3[%c0_4, %c0_5] : memref<12x1xf32, #tpu.memory_space<vmem>>, vector<12x1xf32>
    %5 = vector.broadcast %4 : vector<12x1xf32> to vector<12x256xf32>
    %6 = arith.addf %3, %5 : vector<12x256xf32>
    %7 = vector.extract_strided_slice %6 {offsets = [0, 0], sizes = [4, 256], strides = [1, 1]} : vector<12x256xf32> to vector<4x256xf32>
    %cst_6 = arith.constant 0.000000e+00 : f32
    %8 = vector.broadcast %cst_6 : f32 to vector<4x256xf32>
    %9 = arith.cmpf ogt, %7, %8 : vector<4x256xf32>
    %cst_7 = arith.constant 0.00999999977 : f32
    %10 = vector.broadcast %cst_7 : f32 to vector<4x256xf32>
    %11 = arith.mulf %10, %7 : vector<4x256xf32>
    %12 = arith.select %9, %7, %11 : vector<4x256xi1>, vector<4x256xf32>
    %13 = vector.extract_strided_slice %6 {offsets = [4, 0], sizes = [8, 256], strides = [1, 1]} : vector<12x256xf32> to vector<8x256xf32>
    %cst_8 = arith.constant 0.000000e+00 : f32
    %14 = vector.broadcast %cst_8 : f32 to vector<4x128xf32>
    %c0_9 = arith.constant 0 : index
    %c0_10 = arith.constant 0 : index
    %15 = vector.load %arg13[%c0_9, %c0_10] : memref<4x512xf32, #tpu.memory_space<vmem>>, vector<4x128xf32>
    tpu.vector_store %arg13[%c0_9, %c0_10], %14 {strides = array<i32>} : memref<4x512xf32, #tpu.memory_space<vmem>>, vector<4x128xf32>,
    %c0_11 = arith.constant 0 : index
    %c384 = arith.constant 384 : index
    %16 = vector.load %arg13[%c0_11, %c384] : memref<4x512xf32, #tpu.memory_space<vmem>>, vector<4x128xf32>
    tpu.vector_store %arg13[%c0_11, %c384], %14 {strides = array<i32>} : memref<4x512xf32, #tpu.memory_space<vmem>>, vector<4x128xf32>,
    %c0_12 = arith.constant 0 : index
    %c128 = arith.constant 128 : index
    %17 = vector.load %arg13[%c0_12, %c128] : memref<4x512xf32, #tpu.memory_space<vmem>>, vector<4x256xf32>
    tpu.vector_store %arg13[%c0_12, %c128], %12 {strides = array<i32>} : memref<4x512xf32, #tpu.memory_space<vmem>>, vector<4x256xf32>,
    %c0_13 = arith.constant 0 : index
    %c0_14 = arith.constant 0 : index
    %18 = vector.load %arg4[%c0_13, %c0_14] : memref<4x9xf32, #tpu.memory_space<vmem>>, vector<4x9xf32>
    %19 = vector.extract_strided_slice %18 {offsets = [0, 4], sizes = [4, 1], strides = [1, 1]} : vector<4x9xf32> to vector<4x1xf32>
    %20 = vector.broadcast %19 : vector<4x1xf32> to vector<4x256xf32>
    %21 = arith.mulf %12, %20 : vector<4x256xf32>
    %c0_15 = arith.constant 0 : index
    %c112 = arith.constant 112 : index
    %22 = vector.load %arg13[%c0_15, %c112] : memref<4x512xf32, #tpu.memory_space<vmem>>, vector<4x256xf32>
    %23 = vector.extract_strided_slice %18 {offsets = [0, 1], sizes = [4, 1], strides = [1, 1]} : vector<4x9xf32> to vector<4x1xf32>
    %24 = vector.broadcast %23 : vector<4x1xf32> to vector<4x256xf32>
    %25 = arith.mulf %22, %24 : vector<4x256xf32>
    %26 = arith.addf %21, %25 : vector<4x256xf32>
    %c0_16 = arith.constant 0 : index
    %c144 = arith.constant 144 : index
    %27 = vector.load %arg13[%c0_16, %c144] : memref<4x512xf32, #tpu.memory_space<vmem>>, vector<4x256xf32>
    %28 = vector.extract_strided_slice %18 {offsets = [0, 7], sizes = [4, 1], strides = [1, 1]} : vector<4x9xf32> to vector<4x1xf32>
    %29 = vector.broadcast %28 : vector<4x1xf32> to vector<4x256xf32>
    %30 = arith.mulf %27, %29 : vector<4x256xf32>
    %31 = arith.addf %26, %30 : vector<4x256xf32>
    %32 = tpu.iota {dimensions = array<i32: 1>} : vector<4x256xi32>
    %c16_i32 = arith.constant 16 : i32
    %c0_i32 = arith.constant 0 : i32
    %33 = arith.cmpi eq, %c16_i32, %c0_i32 : i32
    %c1_i32 = arith.constant 1 : i32
    %34 = arith.select %33, %c1_i32, %c16_i32 : i32
    %35 = vector.broadcast %34 : i32 to vector<4x256xi32>
    %36 = arith.remsi %32, %35 : vector<4x256xi32>
    %c0_i32_17 = arith.constant 0 : i32
    %37 = vector.broadcast %c0_i32_17 : i32 to vector<4x256xi32>
    %38 = arith.cmpi ne, %36, %37 : vector<4x256xi32>
    %c0_i32_18 = arith.constant 0 : i32
    %39 = vector.broadcast %c0_i32_18 : i32 to vector<4x256xi32>
    %40 = arith.cmpi slt, %36, %39 : vector<4x256xi32>
    %c0_i32_19 = arith.constant 0 : i32
    %41 = arith.cmpi slt, %34, %c0_i32_19 : i32
    %42 = vector.broadcast %41 : i1 to vector<4x256xi1>
    %43 = vector.broadcast %42 : vector<4x256xi1> to vector<4x256xi1>
    %44 = arith.xori %40, %43 : vector<4x256xi1>
    %45 = arith.andi %44, %38 : vector<4x256xi1>
    %46 = vector.broadcast %34 : i32 to vector<4x256xi32>
    %47 = arith.addi %36, %46 : vector<4x256xi32>
    %48 = arith.select %45, %47, %36 : vector<4x256xi1>, vector<4x256xi32>
    %c0_20 = arith.constant 0 : index
    %c111 = arith.constant 111 : index
    %49 = vector.load %arg13[%c0_20, %c111] : memref<4x512xf32, #tpu.memory_space<vmem>>, vector<4x256xf32>
    %50 = vector.extract_strided_slice %18 {offsets = [0, 0], sizes = [4, 1], strides = [1, 1]} : vector<4x9xf32> to vector<4x1xf32>
    %51 = vector.broadcast %50 : vector<4x1xf32> to vector<4x256xf32>
    %52 = arith.mulf %49, %51 : vector<4x256xf32>
    %c0_21 = arith.constant 0 : index
    %c127 = arith.constant 127 : index
    %53 = vector.load %arg13[%c0_21, %c127] : memref<4x512xf32, #tpu.memory_space<vmem>>, vector<4x256xf32>
    %54 = vector.extract_strided_slice %18 {offsets = [0, 3], sizes = [4, 1], strides = [1, 1]} : vector<4x9xf32> to vector<4x1xf32>
    %55 = vector.broadcast %54 : vector<4x1xf32> to vector<4x256xf32>
    %56 = arith.mulf %53, %55 : vector<4x256xf32>
    %57 = arith.addf %52, %56 : vector<4x256xf32>
    %c0_22 = arith.constant 0 : index
    %c143 = arith.constant 143 : index
    %58 = vector.load %arg13[%c0_22, %c143] : memref<4x512xf32, #tpu.memory_space<vmem>>, vector<4x256xf32>
    %59 = vector.extract_strided_slice %18 {offsets = [0, 6], sizes = [4, 1], strides = [1, 1]} : vector<4x9xf32> to vector<4x1xf32>
    %60 = vector.broadcast %59 : vector<4x1xf32> to vector<4x256xf32>
    %61 = arith.mulf %58, %60 : vector<4x256xf32>
    %62 = arith.addf %57, %61 : vector<4x256xf32>
    %c0_i32_23 = arith.constant 0 : i32
    %63 = vector.broadcast %c0_i32_23 : i32 to vector<4x256xi32>
    %64 = arith.cmpi ne, %48, %63 : vector<4x256xi32>
    %cst_24 = arith.constant 0.000000e+00 : f32
    %65 = vector.broadcast %cst_24 : f32 to vector<4x256xf32>
    %66 = arith.select %64, %62, %65 : vector<4x256xi1>, vector<4x256xf32>
    %67 = arith.addf %31, %66 : vector<4x256xf32>
    %c0_25 = arith.constant 0 : index
    %c113 = arith.constant 113 : index
    %68 = vector.load %arg13[%c0_25, %c113] : memref<4x512xf32, #tpu.memory_space<vmem>>, vector<4x256xf32>
    %69 = vector.extract_strided_slice %18 {offsets = [0, 2], sizes = [4, 1], strides = [1, 1]} : vector<4x9xf32> to vector<4x1xf32>
    %70 = vector.broadcast %69 : vector<4x1xf32> to vector<4x256xf32>
    %71 = arith.mulf %68, %70 : vector<4x256xf32>
    %c0_26 = arith.constant 0 : index
    %c129 = arith.constant 129 : index
    %72 = vector.load %arg13[%c0_26, %c129] : memref<4x512xf32, #tpu.memory_space<vmem>>, vector<4x256xf32>
    %73 = vector.extract_strided_slice %18 {offsets = [0, 5], sizes = [4, 1], strides = [1, 1]} : vector<4x9xf32> to vector<4x1xf32>
    %74 = vector.broadcast %73 : vector<4x1xf32> to vector<4x256xf32>
    %75 = arith.mulf %72, %74 : vector<4x256xf32>
    %76 = arith.addf %71, %75 : vector<4x256xf32>
    %c0_27 = arith.constant 0 : index
    %c145 = arith.constant 145 : index
    %77 = vector.load %arg13[%c0_27, %c145] : memref<4x512xf32, #tpu.memory_space<vmem>>, vector<4x256xf32>
    %78 = vector.extract_strided_slice %18 {offsets = [0, 8], sizes = [4, 1], strides = [1, 1]} : vector<4x9xf32> to vector<4x1xf32>
    %79 = vector.broadcast %78 : vector<4x1xf32> to vector<4x256xf32>
    %80 = arith.mulf %77, %79 : vector<4x256xf32>
    %81 = arith.addf %76, %80 : vector<4x256xf32>
    %c15_i32 = arith.constant 15 : i32
    %82 = vector.broadcast %c15_i32 : i32 to vector<4x256xi32>
    %83 = arith.cmpi ne, %48, %82 : vector<4x256xi32>
    %cst_28 = arith.constant 0.000000e+00 : f32
    %84 = vector.broadcast %cst_28 : f32 to vector<4x256xf32>
    %85 = arith.select %83, %81, %84 : vector<4x256xi1>, vector<4x256xf32>
    %86 = arith.addf %67, %85 : vector<4x256xf32>
    %c0_29 = arith.constant 0 : index
    %c0_30 = arith.constant 0 : index
    %87 = vector.load %arg5[%c0_29, %c0_30] : memref<4x1xf32, #tpu.memory_space<vmem>>, vector<4x1xf32>
    %88 = vector.broadcast %87 : vector<4x1xf32> to vector<4x256xf32>
    %89 = arith.addf %86, %88 : vector<4x256xf32>
    %cst_31 = arith.constant 0.000000e+00 : f32
    %90 = vector.broadcast %cst_31 : f32 to vector<4x256xf32>
    %91 = arith.cmpf ogt, %89, %90 : vector<4x256xf32>
    %cst_32 = arith.constant 0.00999999977 : f32
    %92 = vector.broadcast %cst_32 : f32 to vector<4x256xf32>
    %93 = arith.mulf %92, %89 : vector<4x256xf32>
    %94 = arith.select %91, %89, %93 : vector<4x256xi1>, vector<4x256xf32>
    %c0_33 = arith.constant 0 : index
    %c0_34 = arith.constant 0 : index
    %95 = vector.load %arg6[%c0_33, %c0_34] : memref<8x4xf32, #tpu.memory_space<vmem>>, vector<8x4xf32>
    %cst_35 = arith.constant dense<0.000000e+00> : vector<8x256xf32>
    %96 = tpu.matmul %95, %94, %cst_35 {dimension_numbers = #tpu.dot_dimension_numbers<[1], [0], [0], [1], [0, 0, 1, 1], [], []>} : vector<8x4xf32>, vector<4x256xf32>, vector<8x256xf32> -> vector<8x256xf32>
    %c0_36 = arith.constant 0 : index
    %c0_37 = arith.constant 0 : index
    %97 = vector.load %arg7[%c0_36, %c0_37] : memref<8x1xf32, #tpu.memory_space<vmem>>, vector<8x1xf32>
    %98 = vector.broadcast %97 : vector<8x1xf32> to vector<8x256xf32>
    %99 = arith.addf %96, %98 : vector<8x256xf32>
    %cst_38 = arith.constant 0.000000e+00 : f32
    %100 = vector.broadcast %cst_38 : f32 to vector<8x256xf32>
    %101 = arith.cmpf ogt, %99, %100 : vector<8x256xf32>
    %cst_39 = arith.constant 0.00999999977 : f32
    %102 = vector.broadcast %cst_39 : f32 to vector<8x256xf32>
    %103 = arith.mulf %102, %99 : vector<8x256xf32>
    %104 = arith.select %101, %99, %103 : vector<8x256xi1>, vector<8x256xf32>
    %105 = arith.addf %104, %13 : vector<8x256xf32>
    %c0_40 = arith.constant 0 : index
    %c0_41 = arith.constant 0 : index
    %106 = vector.load %arg8[%c0_40, %c0_41] : memref<32x8xf32, #tpu.memory_space<vmem>>, vector<32x8xf32>
    %cst_42 = arith.constant dense<0.000000e+00> : vector<32x256xf32>
    %107 = tpu.matmul %106, %105, %cst_42 {dimension_numbers = #tpu.dot_dimension_numbers<[1], [0], [0], [1], [0, 0, 1, 1], [], []>} : vector<32x8xf32>, vector<8x256xf32>, vector<32x256xf32> -> vector<32x256xf32>
    %c0_43 = arith.constant 0 : index
    %c0_44 = arith.constant 0 : index
    %108 = vector.load %arg9[%c0_43, %c0_44] : memref<32x1xf32, #tpu.memory_space<vmem>>, vector<32x1xf32>
    %109 = vector.broadcast %108 : vector<32x1xf32> to vector<32x256xf32>
    %110 = arith.addf %107, %109 : vector<32x256xf32>
    %cst_45 = arith.constant 0.000000e+00 : f32
    %111 = vector.broadcast %cst_45 : f32 to vector<32x256xf32>
    %112 = arith.maximumf %110, %111 : vector<32x256xf32>
    %c0_46 = arith.constant 0 : index
    %c0_47 = arith.constant 0 : index
    %113 = vector.load %arg10[%c0_46, %c0_47] : memref<8x32xf32, #tpu.memory_space<vmem>>, vector<8x32xf32>
    %cst_48 = arith.constant dense<0.000000e+00> : vector<8x256xf32>
    %114 = tpu.matmul %113, %112, %cst_48 {dimension_numbers = #tpu.dot_dimension_numbers<[1], [0], [0], [1], [0, 0, 1, 1], [], []>} : vector<8x32xf32>, vector<32x256xf32>, vector<8x256xf32> -> vector<8x256xf32>
    %c0_49 = arith.constant 0 : index
    %c0_50 = arith.constant 0 : index
    %115 = vector.load %arg11[%c0_49, %c0_50] : memref<8x1xf32, #tpu.memory_space<vmem>>, vector<8x1xf32>
    %116 = vector.broadcast %115 : vector<8x1xf32> to vector<8x256xf32>
    %117 = arith.addf %114, %116 : vector<8x256xf32>
    %cst_51 = arith.constant 0.000000e+00 : f32
    %118 = vector.broadcast %cst_51 : f32 to vector<8x256xf32>
    %119 = arith.maximumf %117, %118 : vector<8x256xf32>
    %120 = arith.addf %105, %119 : vector<8x256xf32>
    %c0_52 = arith.constant 0 : index
    %c0_53 = arith.constant 0 : index
    %c0_54 = arith.constant 0 : index
    %121 = vector.load %arg12[%c0_52, %c0_53, %c0_54] : memref<1x8x256xf32, #tpu.memory_space<vmem>>, vector<1x8x256xf32>
    %122 = vector.shape_cast %121 : vector<1x8x256xf32> to vector<8x256xf32>
    %123 = vector.shape_cast %120 : vector<8x256xf32> to vector<1x8x256xf32>
    tpu.vector_store %arg12[%c0_52, %c0_53, %c0_54], %123 {strides = array<i32>} : memref<1x8x256xf32, #tpu.memory_space<vmem>>, vector<1x8x256xf32>,
    return
  }
  func.func @transform_0(%arg0: i32) -> (i32, i32, i32) {
    %c0_i32 = arith.constant 0 : i32
    %c0_i32_0 = arith.constant 0 : i32
    %c0_i32_1 = arith.constant 0 : i32
    return %arg0, %c0_i32, %c0_i32_0 : i32, i32, i32
  }
  func.func @transform_1(%arg0: i32) -> (i32, i32) {
    %c0_i32 = arith.constant 0 : i32
    %c0_i32_0 = arith.constant 0 : i32
    %c0_i32_1 = arith.constant 0 : i32
    return %c0_i32, %c0_i32_0 : i32, i32
  }
  func.func @transform_2(%arg0: i32) -> (i32, i32) {
    %c0_i32 = arith.constant 0 : i32
    %c0_i32_0 = arith.constant 0 : i32
    %c0_i32_1 = arith.constant 0 : i32
    return %c0_i32, %c0_i32_0 : i32, i32
  }
  func.func @transform_3(%arg0: i32) -> (i32, i32) {
    %c0_i32 = arith.constant 0 : i32
    %c0_i32_0 = arith.constant 0 : i32
    %c0_i32_1 = arith.constant 0 : i32
    return %c0_i32, %c0_i32_0 : i32, i32
  }
  func.func @transform_4(%arg0: i32) -> (i32, i32) {
    %c0_i32 = arith.constant 0 : i32
    %c0_i32_0 = arith.constant 0 : i32
    %c0_i32_1 = arith.constant 0 : i32
    return %c0_i32, %c0_i32_0 : i32, i32
  }
  func.func @transform_5(%arg0: i32) -> (i32, i32) {
    %c0_i32 = arith.constant 0 : i32
    %c0_i32_0 = arith.constant 0 : i32
    %c0_i32_1 = arith.constant 0 : i32
    return %c0_i32, %c0_i32_0 : i32, i32
  }
  func.func @transform_6(%arg0: i32) -> (i32, i32) {
    %c0_i32 = arith.constant 0 : i32
    %c0_i32_0 = arith.constant 0 : i32
    %c0_i32_1 = arith.constant 0 : i32
    return %c0_i32, %c0_i32_0 : i32, i32
  }
  func.func @transform_7(%arg0: i32) -> (i32, i32) {
    %c0_i32 = arith.constant 0 : i32
    %c0_i32_0 = arith.constant 0 : i32
    %c0_i32_1 = arith.constant 0 : i32
    return %c0_i32, %c0_i32_0 : i32, i32
  }
  func.func @transform_8(%arg0: i32) -> (i32, i32) {
    %c0_i32 = arith.constant 0 : i32
    %c0_i32_0 = arith.constant 0 : i32
    %c0_i32_1 = arith.constant 0 : i32
    return %c0_i32, %c0_i32_0 : i32, i32
  }
  func.func @transform_9(%arg0: i32) -> (i32, i32) {
    %c0_i32 = arith.constant 0 : i32
    %c0_i32_0 = arith.constant 0 : i32
    %c0_i32_1 = arith.constant 0 : i32
    return %c0_i32, %c0_i32_0 : i32, i32
  }
  func.func @transform_10(%arg0: i32) -> (i32, i32) {
    %c0_i32 = arith.constant 0 : i32
    %c0_i32_0 = arith.constant 0 : i32
    %c0_i32_1 = arith.constant 0 : i32
    return %c0_i32, %c0_i32_0 : i32, i32
  }
  func.func @transform_11(%arg0: i32) -> (i32, i32, i32) {
    %c0_i32 = arith.constant 0 : i32
    %c0_i32_0 = arith.constant 0 : i32
    %c0_i32_1 = arith.constant 0 : i32
    return %arg0, %c0_i32, %c0_i32_0 : i32, i32, i32
  }
}

</mosaic_0001>

<bundles_post_ra>
// kernel: tpu_custom_call.1
= control target key start
LH: loop header
LB: loop body
LE: loop exit
PB: predicated region body
PF: predicated region fallthrough
CT: control target
= control target key end

     0   :  { %s1708_s0 = inlined_call_operand.vmem [shape: f32[2,4,256], index: 0, kind: input, shape index: {}]   ;;  %s1709_s1 = inlined_call_operand.vmem [shape: f32[12,4], index: 1, kind: input, shape index: {}]   ;;  %s1710_s2 = inlined_call_operand.vmem [shape: f32[12,1], index: 2, kind: input, shape index: {}]   ;;  %s1711_s3 = inlined_call_operand.vmem [shape: f32[4,9], index: 3, kind: input, shape index: {}]   ;;  %s1712_s4 = inlined_call_operand.vmem [shape: f32[4,1], index: 4, kind: input, shape index: {}]   ;;  %s1713_s5 = inlined_call_operand.vmem [shape: f32[8,4], index: 5, kind: input, shape index: {}]   ;;  %s1714_s6 = inlined_call_operand.vmem [shape: f32[8,1], index: 6, kind: input, shape index: {}]   ;;  %s1715_s7 = inlined_call_operand.vmem [shape: f32[32,8], index: 7, kind: input, shape index: {}]   ;;  %s1716_s8 = inlined_call_operand.vmem [shape: f32[32,1], index: 8, kind: input, shape index: {}]   ;;  %s1717_s9 = inlined_call_operand.vmem [shape: f32[8,32], index: 9, kind: input, shape index: {}]   ;;  %s1718_s10 = inlined_call_operand.vmem [shape: f32[8,1], index: 10, kind: input, shape index: {}]   ;;  %s1719_s11 = inlined_call_operand.hbm [shape: f32[2,8,256], index: 11, kind: output, shape index: {}]  }
   0x1   :  { %1720 = sst [smem:[#allocation6_spill]] %s1708_s0 }
   0x2   :  { %16 = vsyncpa [#allocation4], 0 }
   0x3   :  { %18 = vsyncpa [#allocation4 + $0x1], 0  ;;  %s1445_s17 = smov 0   ;;  %s1447_s18 = smov 0  }
   0x4   :  { %s1449_s19 = smov 0   ;;  %s1451_s20 = smov 0  }
   0x5 LB: > { %s1466_s21 = sadd.s32 4294967295, %s1366_s20   ;;  %s1202_s22 = sadd.s32 4294967294, %s1366_s20   ;;  %s1366_s20 = sphi %s1451_s20, %s1731_s20   ;;  %s1362_s19 = sphi %s1449_s19, %s1730_s19   ;;  %s1358_s18 = sphi %s1447_s18, %s1729_s18   ;;  %s1354_s17 = sphi %s1445_s17, %s1728_s17  }
   0x6   : > { %s1470_s23 = sadd.s32 1, %s1366_s20   ;;  %s267_s24 = sadd.s32 1, %s1362_s19 }
   0x7   : > { %s264_s25 = ssub.s32 %s1366_s20, %s1470_s23  ;;  %p277_p0 = scmp.ne.s32.totalorder %s1362_s19, %s1358_s18 }
   0x8   : > { %p265_p1 = scmp.eq.s32.totalorder %s264_s25, 0  ;;  %p278_p2 = scmp.eq.s32.totalorder %s1466_s21, 1 }
   0x9   : > { %p283_p3 = scmp.ne.s32.totalorder %s1358_s18, %s1354_s17  ;;  %p284_p4 = scmp.eq.s32.totalorder %s1202_s22, 1 }
   0xa   : > { %s1481_s26 = scalar_select %p265_p1, %s1362_s19, %s267_s24  }
   0xb   : > { %p1483_p5 = por %p278_p2, %p277_p0  ;;  %p1487_p6 = por %p284_p4, %p283_p3 }
   0xc   : > { %p1205_p7 = scmp.ge.s32.totalorder %s1366_s20, 1  ;;  %p340_p8 = scmp.lt.s32.totalorder %s1366_s20, 3 }
   0xe   : > { %p341_p9 = pnand %p1205_p7, %p340_p8 }
   0xf   : > { %p380_p10 = scmp.lt.s32.totalorder (!%p341_p9), %s1466_s21, 1  ;;  %v1368_v0 = vmov (!%p341_p9), 0.0   ;;  %v1369_v1 = vmov (!%p341_p9), 6   ;;  %v1500_v2 = vld [vmem:[%s1711_s3] sm:$0xf] (!%p341_p9)  ;;  %v1370_v4 = vmov (!%p341_p9), 0   ;;  %v520_v18 = vlaneseq (!%p341_p9) }
  0x10   : > { %344 = sbr.rel (%p341_p9) target bundleno = 1215 (0x4bf), region = 64  ;;  %478 = vmatprep.mubr.f32.mxu0 (!%p341_p9), %v1368_v0  ;;  %497 = vst [vmem:[#allocation2] sm:$0xf] (!%p341_p9), %v1368_v0  ;;  %498 = vst [vmem:[#allocation2 + $0xc] sm:$0xf] (!%p341_p9), %v1368_v0  ;;  %1293 = vset.pattern.permute.xlu1 (!%p341_p9), %v1369_v1  ;;  %v388_v3 = vld [vmem:[%s1710_s2] sm:$0xff] (!%p341_p9) }
  0x11   : > { %646 = vperm.xlu1 (!%p341_p9), %1293, %v1500_v2   ;;  %1291 = vset.pattern.permute.xlu0 (!%p341_p9), %v1370_v4  ;;  %s1723_s0 = sld [smem:[#allocation6_spill]] (!%p341_p9)  ;;  %vm409_vm0 = vcmask (!%p341_p9), 1043456   ;;  %v1371_v6 = vmov (!%p341_p9), 5   ;;  %v1372_v8 = vmov (!%p341_p9), 3   ;;  %v386_v9 = vld [vmem:[%s1709_s1] sm:$0xff] (!%p341_p9)  ;;  %vm402_vm1 = vcmask (!%p341_p9), 31744  }
  0x12   : > { %392 = vperm.xlu0 (!%p341_p9), %1291, %v388_v3   ;;  %875 = vmatprep.mubr.f32.mxu1 (!%p341_p9), %v1368_v0  ;;  %v1373_v10 = vmov (!%p341_p9), 8   ;;  %v1374_v11 = vmov (!%p341_p9), 1   ;;  %v1375_v12 = vmov (!%p341_p9), 7   ;;  %v1376_v13 = vmov (!%p341_p9), 2   ;;  %v387_v25 = vld [vmem:[%s1709_s1 + $0x8] sm:$0xf] (!%p341_p9) }
  0x13   : > { %v1377_v14 = vmov (!%p341_p9), 4   ;;  %v1378_v16 = vmov (!%p341_p9), 839922192   ;;  %v521_v20 = vshrl.u32 (!%p341_p9), %v520_v18, 7  ;;  %s1379_s13 = smov (!%p341_p9), 96   ;;  %vm567_vm4 = vcmask (!%p341_p9), 916480  }
  0x14   : > { %v518_v17 = vunpack.c.l.s4 (!%p341_p9), %v1378_v16  ;;  %vm665_vm5 = vcmask (!%p341_p9), 785408   ;;  %s1383_s25 = smov (!%p341_p9), 15   ;;  %vm536_vm6 = vcmask (!%p341_p9), 130048   ;;  %vm683_vm7 = vcmask (!%p341_p9), 138240   ;;  %s377_s16 = sand.u32 (!%p341_p9), 1, %s1358_s18  }
  0x15   : > { %1294 = vset.pattern.permute.xlu1 (!%p341_p9), %v1371_v6  ;;  %vm772_vm10 = vcmask (!%p341_p9), 121856   ;;  %s1206_s22 = sshll.u32 (!%p341_p9), %s377_s16, 4 }
  0x16   : > { %710 = vperm.xlu1 (!%p341_p9), %1294, %v1500_v2   ;;  %1292 = vset.pattern.permute.xlu0 (!%p341_p9), %v1372_v8  ;;  %v519_v19 = vunpack.c.0.s8 (!%p341_p9), %v518_v17  ;;  %s379_s29 = scalar_lea.vmem (!%p341_p9), [#allocation3], %s1206_s22 }
  0x17   : > { %s381_s14 = scalar_select %p380_p10, %s1466_s21, 1  ;;  %617 = vperm.xlu0 %1292, %v1500_v2   ;;  %v708_v43 = vld [vmem:[#allocation2 + $0xc] sm:$0xf] }
  0x18   : > { %v522_v22 = vsub.s32 %v519_v19, %v521_v20  ;;  %v544_v56 = vld [vmem:[#allocation2 + $0xc] sm:$0xf] }
  0x19   : > { %s1226_s15 = sshll.u32 %s381_s14, 3  ;;  %s1380_s14 = smov 112   ;;  %v644_v62 = vld [vmem:[#allocation2 + $0xc] sm:$0xf] }
  0x1a   : > { %s384_s24 = scalar_lea.vmem %s1723_s0, %s1226_s15  ;;  %1295 = vset.pattern.permute.xlu1 %v1373_v10  ;;  %s1381_s15 = smov 16  }
  0x1b   : > { %v385_v5 = vld [vmem:[%s384_s24] sm:$0xff]  ;;  %736 = vperm.xlu1 %1295, %v1500_v2   ;;  %1296 = vset.pattern.permute.xlu0 %v1370_v4  ;;  %s1382_s24 = smov 17  }
  0x1c   : > { %v401_v7 = vcombine.high %v385_v5, %v385_v5  ;;  %604 = vperm.xlu0 %1296, %v1500_v2  }
  0x1e   : > { %1209 = vmatprep.subr.msk.mxu0 %vm409_vm0, %v401_v7 }
  0x1f   : > { %1210 = vmatpush1.msk.msra.mxu0 %vm409_vm0, %v385_v5  ;;  %1297 = vset.pattern.permute.xlu1 %v1374_v11 }
  0x20   : > { %1211 = vmatmul.mubr.msk.f32.vlgmr.msra.gmra.mrb[0].mxu0 %vm402_vm1, %v386_v9  ;;  %515 = vperm.xlu1 %1297, %v1500_v2  }
  0x21   : > { %484 = vmatprep.mubr.f32.mxu0 %v1368_v0  ;;  %1299 = vset.pattern.permute.xlu0 %v1375_v12 }
  0x22   : > { %546 = vperm.xlu0 %1299, %v1500_v2  }
  0x24   : > { %1298 = vset.pattern.permute.xlu1 %v1376_v13  ;;  %1212 = vmatmul.mubr.msk.f32.gmra.mrb[2].mxu0 %vm402_vm1, %v387_v25 }
  0x25   : > { %695 = vperm.xlu1 %1298, %v1500_v2   ;;  %1115 = vmatprep.mubr.f32.mxu0 %v1368_v0 }
  0x26   : > { %1300 = vset.pattern.permute.xlu0 %v1377_v14 }
  0x29   : > { %1301 = vset.pattern.permute.xlu1 %v1370_v4 }
  0x90   : > { %v647_v26 = vpop.permute.xlu1 %646 }
  0x91   : > { %v393_v15 = vpop.permute.xlu0 %392  ;;  %v654_v35 = vrot.slane %v647_v26, %v522_v22 }
  0x93   : > { %v657_v63 = vmul.f32 %v654_v35, %v644_v62 }
  0x95   : > { %v711_v27 = vpop.permute.xlu1 %710 }
  0x96   : > { %v618_v21 = vpop.permute.xlu0 %617  ;;  %v718_v44 = vrot.slane %v711_v27, %v522_v22 }
  0x97   : > { %v625_v46 = vrot.slane %v618_v21, %v522_v22 }
  0x98   : > { %v721_v48 = vmul.f32 %v718_v44, %v708_v43 }
  0x9a   : > { %v737_v28 = vpop.permute.xlu1 %736 }
  0x9b   : > { %v605_v23 = vpop.permute.xlu0 %604  ;;  %v744_v40 = vrot.slane %v737_v28, %v522_v22 }
  0x9c   : > { %v612_v24 = vrot.slane %v605_v23, %v522_v22 }
  0x9d   : > { %v747_v3 = vmul.f32 %v744_v40, %v708_v43 }
  0x9f   : > { %v516_v37 = vpop.permute.xlu1 %515 }
  0xa0   : > { %v523_v61 = vrot.slane %v516_v37, %v522_v22 }
  0xa1   : > { %v547_v55 = vpop.permute.xlu0 %546 }
  0xa2   : > { %v554_v58 = vrot.slane %v547_v55, %v522_v22  ;;  %v1041_v55 = vld [vmem:[%s1718_s10] sm:$0xff] }
  0xa4   : > { %v696_v42 = vpop.permute.xlu1 %695  ;;  %v557_v59 = vmul.f32 %v554_v58, %v544_v56 }
  0xa5   : > { %v1551_v47 = vrot.slane %v696_v42, %v522_v22 }
  0xf3   : > { %v480_v29 = vpop.f32.mrb[0].mxu0 }
  0xf4   : > { %v1534_v30 = vadd.f32 %v480_v29, %v393_v15  ;;  %v482_v31 = vpop.f32.mrb[1].mxu0 }
  0xf5   : > { %v1536_v32 = vadd.f32 %v482_v31, %v393_v15 }
  0xf6   : > { %vm491_vm2 = vcmp.gt.f32.partialorder %v1534_v30, 0.0  ;;  %v493_v33 = vmul.f32 0.01, %v1534_v30 }
  0xf7   : > { %vm492_vm3 = vcmp.gt.f32.partialorder %v1536_v32, 0.0  ;;  %v494_v34 = vmul.f32 0.01, %v1536_v32 }
  0xf8   : > { %v1543_v36 = vsel %vm491_vm2, %v1534_v30, %v493_v33  ;;  %vm1047_vm2 = vcmask 261120  }
  0xf9   : > { %v1546_v38 = vsel %vm492_vm3, %v1536_v32, %v494_v34 }
  0xfa   : > { %v501_v39 = vcombine.low %v1543_v36, %v1546_v38 }
  0xfc   : > { %503 = vst [vmem:[#allocation2 + $0x4] sm:$0xff] %v501_v39  ;;  %v656_v41 = vmul.f32 %v654_v35, %v501_v39  ;;  %v746_v45 = vmul.f32 %v744_v40, %v501_v39  ;;  %v720_v60 = vmul.f32 %v718_v44, %v501_v39  ;;  %v556_v5 = vmul.f32 %v554_v58, %v501_v39 }
  0xfe   : > { %660 = vrot.lane.b32.xlu0 %v656_v41, %s1379_s13  ;;  %v560_v8 = vcombine.high %v556_v5, %v556_v5 }
 0x102   : > { %750 = vrot.lane.b32.xlu0 %v746_v45, %s1379_s13 }
 0x103   : > { %v601_v49 = vld [vmem:[#allocation2] sm:$0xff]  ;;  %v602_v50 = vld [vmem:[#allocation2 + $0x8] sm:$0xf] }
 0x104   : > { %v627_v51 = vmul.f32 %v625_v46, %v601_v49  ;;  %v614_v52 = vmul.f32 %v612_v24, %v601_v49  ;;  %v615_v53 = vmul.f32 %v612_v24, %v602_v50  ;;  %v705_v54 = vmul.f32 %v1551_v47, %v601_v49  ;;  %v513_v6 = vld [vmem:[#allocation2 + $0x8] sm:$0xf] }
 0x105   : > { %v628_v57 = vmul.f32 %v625_v46, %v602_v50  ;;  %v525_v1 = vmul.f32 %v601_v49, %v523_v61  ;;  %v526_v7 = vmul.f32 %v523_v61, %v513_v6  ;;  %v693_v24 = vld [vmem:[#allocation2 + $0x8] sm:$0xf]  ;;  %v906_v50 = vld [vmem:[%s1716_s8] sm:$0xff]  ;;  %v575_v61 = vand.u32 127, %v520_v18 }
 0x106   : > { %631 = vrot.lane.b32.xlu1 %v627_v51, %s1380_s14  ;;  %726 = vrot.lane.b32.xlu0 %v721_v48, %s1380_s14  ;;  %v706_v37 = vmul.f32 %v1551_v47, %v693_v24  ;;  %v1578_v48 = vpop.f32.mrb[2].mxu0  ;;  %v389_v47 = vld [vmem:[%s1710_s2 + $0x8] sm:$0xf] }
 0x107   : > { %v1583_v49 = vpop.f32.mrb[3].mxu0  ;;  %v907_v51 = vld [vmem:[%s1716_s8 + $0x8] sm:$0xff]  ;;  %v581_v6 = vand.u32 15, %v575_v61 }
 0x109   : > { %vm1610_vm9 = vcmp.ne.s32.totalorder %v581_v6, 0  ;;  %vm761_vm12 = vcmp.ne.s32.totalorder %v581_v6, 15 }
 0x10a   : > { %633 = vrot.lane.b32.xlu1 %v628_v57, %s1380_s14  ;;  %507 = vperm.xlu0 %1300, %v1500_v2   ;;  %v781_v2 = vld [vmem:[%s1712_s4] sm:$0xf] }
 0x10e   : > { %724 = vrot.lane.b32.xlu1 %v720_v60, %s1380_s14  ;;  %565 = vrot.lane.b32.xlu0 %v557_v59, %s1380_s14 }
 0x10f   : > { %1302 = vset.pattern.permute.xlu0 %v1370_v4  ;;  %v529_v4 = vcombine.high %v525_v1, %v525_v1 }
 0x112   : > { %662 = vrot.lane.b32.xlu1 %v657_v63, %s1379_s13  ;;  %530 = vrot.lane.b32.xlu0 %v525_v1, %s1381_s15  ;;  %v576_v63 = vadd.s32 128, %v575_v61 }
 0x116   : > { %752 = vrot.lane.b32.xlu1 %v747_v3, %s1379_s13  ;;  %561 = vrot.lane.b32.xlu0 %v556_v5, %s1380_s14  ;;  %v588_v5 = vand.u32 15, %v576_v63  ;;  %v903_v63 = vld [vmem:[%s1715_s7 + $0x8] sm:$0xff] }
 0x118   : > { %vm1605_vm8 = vcmp.ne.s32.totalorder %v588_v5, 0  ;;  %vm762_vm11 = vcmp.ne.s32.totalorder %v588_v5, 15 }
 0x11a   : > { %784 = vperm.xlu1 %1301, %v781_v2  }
 0x11e   : > { %534 = vrot.lane.b32.xlu1 %v526_v7, %s1381_s15 }
 0x122   : > { %532 = vrot.lane.b32.xlu1 %v529_v4, %s1381_s15  ;;  %s1384_s15 = smov [#allocation3]  }
 0x123   : > { %s1308_s22 = sshll.u32 %s1384_s15, 4  ;;  %s1309_s22 = int_to_ptr.vmem [resolvable:$false] %s1308_s22 }
 0x124   : > { %s1310_s0 = scalar_lea.vmem %s1309_s22, 512 }
 0x126   : > { %563 = vrot.lane.b32.xlu1 %v560_v8, %s1380_s14 }
 0x170   : > { %v661_v9 = vpop.permute.xlu0 %660 }
 0x171   : > { %v664_v14 = vrot.slane %v661_v9, 4 }
 0x173   : > { %v666_v23 = vsel %vm665_vm5, %v664_v14, %v661_v9 }
 0x174   : > { %v751_v15 = vpop.permute.xlu0 %750 }
 0x175   : > { %v754_v20 = vrot.slane %v751_v15, 4 }
 0x177   : > { %v755_v33 = vsel %vm665_vm5, %v754_v20, %v751_v15 }
 0x178   : > { %v632_v10 = vpop.permute.xlu1 %631  ;;  %v727_v28 = vpop.permute.xlu0 %726 }
 0x179   : > { %v635_v12 = vrot.slane %v632_v10, 4 }
 0x17c   : > { %v634_v11 = vpop.permute.xlu1 %633 }
 0x17d   : > { %v636_v13 = vrot.slane %v634_v11, 4  ;;  %v642_v27 = vadd.f32 %v634_v11, %v615_v53  ;;  %v796_v53 = vld [vmem:[%s1714_s6] sm:$0xff] }
 0x17f   : > { %v637_v16 = vsel %vm409_vm0, %v635_v12, %v636_v13 }
 0x180   : > { %v725_v17 = vpop.permute.xlu1 %724  ;;  %v638_v19 = vsel %vm567_vm4, %v632_v10, %v637_v16 }
 0x181   : > { %v728_v21 = vrot.slane %v725_v17, 4  ;;  %v641_v22 = vadd.f32 %v638_v19, %v614_v52  ;;  %v909_v52 = vld [vmem:[%s1716_s8 + $0x18] sm:$0xff] }
 0x183   : > { %v729_v25 = vsel %vm567_vm4, %v728_v21, %v725_v17  ;;  %v670_v26 = vadd.f32 %v666_v23, %v641_v22  ;;  %v730_v35 = vsel %vm567_vm4, %v728_v21, %v727_v28 }
 0x184   : > { %v733_v29 = vadd.f32 %v729_v25, %v705_v54  ;;  %v663_v31 = vpop.permute.xlu1 %662  ;;  %v734_v42 = vadd.f32 %v730_v35, %v706_v37  ;;  %v908_v54 = vld [vmem:[%s1716_s8 + $0x10] sm:$0xff] }
 0x185   : > { %v667_v34 = vsel %vm665_vm5, %v664_v14, %v663_v31  ;;  %677 = vrot.lane.b32.xlu1 %v670_v26, %s1382_s24  ;;  %v676_v41 = vcombine.high %v670_v26, %v670_v26 }
 0x186   : > { %v759_v39 = vadd.f32 %v755_v33, %v733_v29  ;;  %v671_v40 = vadd.f32 %v667_v34, %v642_v27 }
 0x188   : > { %v753_v43 = vpop.permute.xlu1 %752  ;;  %681 = vrot.lane.b32.xlu0 %v671_v40, %s1382_s24  ;;  %v765_v46 = vcombine.high %v759_v39, %v759_v39 }
 0x189   : > { %v756_v44 = vsel %vm665_vm5, %v754_v20, %v753_v43  ;;  %679 = vrot.lane.b32.xlu1 %v676_v41, %s1382_s24  ;;  %v508_v57 = vpop.permute.xlu0 %507  ;;  %s1227_s24 = sshll.u32 %s1466_s21, 8  ;;  %s1129_s21 = scalar_lea.sflag [#allocation4], %s377_s16 }
 0x18a   : > { %v760_v45 = vadd.f32 %v756_v44, %v734_v42  ;;  %v511_v4 = vmul.f32 %v508_v57, %v1546_v38  ;;  %v510_v15 = vmul.f32 %v508_v57, %v1543_v36  ;;  %v795_v42 = vld [vmem:[%s1713_s5] sm:$0xff]  ;;  %s1666_s13 = scalar_lea.hbm %s1719_s11, %s1227_s24 }
 0x18c   : > { %768 = vrot.lane.b32.xlu0 %v765_v46, %s1383_s25 }
 0x18d   : > { %770 = vrot.lane.b32.xlu1 %v760_v45, %s1383_s25  ;;  %v566_v59 = vpop.permute.xlu0 %565 }
 0x190   : > { %766 = vrot.lane.b32.xlu0 %v759_v39, %s1383_s25  ;;  %s1143_s25 = sshll.u32 %s379_s29, 4  ;;  %s1668_s25 = int_to_ptr.vmem [resolvable:$true] %s1143_s25 }
 0x191   : > { %397 = vperm.xlu1 %1301, %v389_v47   ;;  %v531_v62 = vpop.permute.xlu0 %530  ;;  %v892_v47 = vrot.slane %v1534_v30, 4  ;;  %s1304_s14 = scalar_lea.vmem %s1668_s25, 256  ;;  %p1311_p0 = scmp.lt.s32.totalorder %s1668_s25, %s1309_s22 }
 0x192   : > { %p1305_p11 = scmp.ne.s32.totalorder %s1668_s25, %s1304_s14  ;;  %p1312_p1 = scmp.lt.s32.totalorder %s1310_s0, %s1304_s14 }
 0x194   : > { %799 = vperm.xlu0 %1302, %v796_v53   ;;  %p1306_p12 = pnand %p1305_p11, %p1483_p5  ;;  %p1313_p2 = por %p1312_p1, %p1311_p0 }
 0x195   : > { %912 = vperm.xlu1 %1301, %v906_v50   ;;  %v562_v3 = vpop.permute.xlu0 %561  ;;  %v895_v50 = vrot.slane %v1536_v32, 4 }
 0x196   : > { %p1307_p13 = pneg %p1306_p12 }
 0x198   : > { %922 = vperm.xlu0 %1302, %v908_v54   ;;  %p1314_p3 = pnand %p1313_p2, %p1307_p13 }
 0x199   : > { %917 = vperm.xlu1 %1301, %v907_v51   ;;  %v785_v56 = vpop.permute.xlu1 %784 }
 0x19c   : > { %1044 = vperm.xlu0 %1302, %v1041_v55  }
 0x19d   : > { %927 = vperm.xlu1 %1301, %v909_v52   ;;  %v535_v58 = vpop.permute.xlu1 %534 }
 0x1a1   : > { %v533_v60 = vpop.permute.xlu1 %532 }
 0x1a2   : > { %v538_v7 = vsel %vm536_vm6, %v533_v60, %v535_v58  ;;  %v537_v11 = vsel %vm536_vm6, %v531_v62, %v533_v60  ;;  %v902_v62 = vld [vmem:[%s1715_s7] sm:$0xff] }
 0x1a3   : > { %v542_v12 = vadd.f32 %v538_v7, %v511_v4  ;;  %v541_v21 = vadd.f32 %v537_v11, %v510_v15 }
 0x1a5   : > { %v564_v1 = vpop.permute.xlu1 %563 }
 0x1a6   : > { %v569_v10 = vsel %vm567_vm4, %v564_v1, %v566_v59  ;;  %v568_v17 = vsel %vm567_vm4, %v562_v3, %v564_v1  ;;  %v904_v1 = vld [vmem:[%s1715_s7 + $0x10] sm:$0xff]  ;;  %v905_v3 = vld [vmem:[%s1715_s7 + $0x18] sm:$0xff] }
 0x1a7   : > { %v573_v19 = vadd.f32 %v569_v10, %v542_v12  ;;  %v572_v26 = vadd.f32 %v568_v17, %v541_v21 }
 0x1f7   : > { %v678_v2 = vpop.permute.xlu1 %677 }
 0x1fa   : > { %v682_v8 = vpop.permute.xlu0 %681 }
 0x1fb   : > { %v680_v18 = vpop.permute.xlu1 %679 }
 0x1fc   : > { %v685_v14 = vsel %vm683_vm7, %v680_v18, %v682_v8  ;;  %v684_v16 = vsel %vm683_vm7, %v678_v2, %v680_v18 }
 0x1fd   : > { %v689_v38 = vsel %vm1605_vm8, %v685_v14, 0.0  ;;  %v688_v23 = vsel %vm1610_vm9, %v684_v16, 0.0 }
 0x1fe   : > { %v769_v20 = vpop.permute.xlu0 %768  ;;  %v691_v24 = vadd.f32 %v689_v38, %v573_v19  ;;  %v690_v29 = vadd.f32 %v688_v23, %v572_v26 }
 0x1ff   : > { %v771_v22 = vpop.permute.xlu1 %770 }
 0x200   : > { %v774_v25 = vsel %vm772_vm10, %v769_v20, %v771_v22 }
 0x201   : > { %v778_v36 = vsel %vm762_vm11, %v774_v25, 0.0 }
 0x202   : > { %v780_v27 = vadd.f32 %v778_v36, %v691_v24  ;;  %v767_v28 = vpop.permute.xlu0 %766 }
 0x203   : > { %v773_v31 = vsel %vm772_vm10, %v767_v28, %v769_v20 }
 0x204   : > { %v777_v33 = vsel %vm761_vm12, %v773_v31, 0.0  ;;  %v788_v34 = vadd.f32 %v785_v56, %v780_v27 }
 0x205   : > { %v779_v35 = vadd.f32 %v777_v33, %v690_v29 }
 0x206   : > { %vm790_vm13 = vcmp.gt.f32.partialorder %v788_v34, 0.0  ;;  %v792_v37 = vmul.f32 0.01, %v788_v34 }
 0x207   : > { %v787_v39 = vadd.f32 %v785_v56, %v779_v35 }
 0x208   : > { %v794_v40 = vsel %vm790_vm13, %v788_v34, %v792_v37  ;;  %v1040_v34 = vld [vmem:[%s1717_s9] sm:$0xff] }
 0x209   : > { %1213 = vmatprep.subr.msk.mxu1 %vm409_vm0, %v794_v40  ;;  %vm789_vm14 = vcmp.gt.f32.partialorder %v787_v39, 0.0  ;;  %v791_v41 = vmul.f32 0.01, %v787_v39 }
 0x20b   : > { %v793_v43 = vsel %vm789_vm14, %v787_v39, %v791_v41 }
 0x20c   : > { %1214 = vmatpush1.msk.msra.mxu1 %vm409_vm0, %v793_v43 }
 0x20d   : > { %1215 = vmatmul.mubr.msk.f32.vlgmr.msra.gmra.mrb[0].mxu1 %vm402_vm1, %v795_v42 }
 0x20e   : > { %1007 = vmatprep.mubr.f32.mxu1 %v1368_v0 }
 0x210   : > { %v398_v44 = vpop.permute.xlu1 %397 }
 0x211   : > { %v487_v45 = vadd.f32 %v1578_v48, %v398_v44  ;;  %v489_v46 = vadd.f32 %v1583_v49, %v398_v44 }
 0x213   : > { %v893_v51 = vrot.slane %v487_v45, 4  ;;  %v896_v52 = vrot.slane %v489_v46, 4  ;;  %v800_v55 = vpop.permute.xlu0 %799 }
 0x214   : > { %v913_v5 = vpop.permute.xlu1 %912 }
 0x215   : > { %v894_v53 = vsel %vm409_vm0, %v892_v47, %v893_v51  ;;  %v897_v54 = vsel %vm409_vm0, %v895_v50, %v896_v52  ;;  %vm930_vm0 = vcmask 64512  }
 0x217   : > { %v923_v17 = vpop.permute.xlu0 %922 }
 0x218   : > { %v918_v4 = vpop.permute.xlu1 %917 }
 0x21b   : > { %v1045_v35 = vpop.permute.xlu0 %1044 }
 0x21c   : > { %v928_v21 = vpop.permute.xlu1 %927 }
 0x2e0   : > { %v877_v56 = vpop.f32.mrb[0].mxu1 }
 0x2e1   : > { %v878_v57 = vadd.f32 %v877_v56, %v800_v55  ;;  %v879_v58 = vpop.f32.mrb[1].mxu1 }
 0x2e2   : > { %v880_v59 = vadd.f32 %v879_v58, %v800_v55 }
 0x2e3   : > { %vm882_vm15 = vcmp.gt.f32.partialorder %v878_v57, 0.0  ;;  %v884_v60 = vmul.f32 0.01, %v878_v57 }
 0x2e4   : > { %vm883_vm1 = vcmp.gt.f32.partialorder %v880_v59, 0.0  ;;  %v885_v48 = vmul.f32 0.01, %v880_v59 }
 0x2e5   : > { %v886_v49 = vsel %vm882_vm15, %v878_v57, %v884_v60 }
 0x2e6   : > { %v1635_v61 = vadd.f32 %v894_v53, %v886_v49  ;;  %v887_v30 = vsel %vm883_vm1, %v880_v59, %v885_v48 }
 0x2e7   : > { %v1637_v32 = vadd.f32 %v897_v54, %v887_v30 }
 0x2e9   : > { %943 = vmatprep.subr.mxu1 %v1637_v32 }
 0x2ea   : > { %944 = vmatpush1.msra.mxu1 %v1635_v61 }
 0x2eb   : > { %1216 = vmatmul.mubr.msk.f32.vlgmr.msra.gmra.mrb[2].mxu1 %vm930_vm0, %v902_v62 }
 0x2ec   : > { %1013 = vmatprep.mubr.f32.mxu1 %v1368_v0 }
 0x2ef   : > { %1217 = vmatmul.mubr.msk.f32.gmra.mrb[4].mxu1 %vm930_vm0, %v903_v63 }
 0x2f0   : > { %1019 = vmatprep.mubr.f32.mxu1 %v1368_v0 }
 0x2f3   : > { %1218 = vmatmul.mubr.msk.f32.gmra.mrb[6].mxu1 %vm930_vm0, %v904_v1 }
 0x2f4   : > { %1025 = vmatprep.mubr.f32.mxu1 %v1368_v0 }
 0x2f7   : > { %1219 = vmatmul.mubr.msk.f32.gmra.mrb[8].mxu1 %vm930_vm0, %v905_v3 }
 0x3be   : > { %v1009_v2 = vpop.f32.mrb[2].mxu1 }
 0x3bf   : > { %v1011_v6 = vpop.f32.mrb[3].mxu1  ;;  %v1010_v7 = vadd.f32 %v1009_v2, %v913_v5 }
 0x3c0   : > { %v1012_v8 = vadd.f32 %v1011_v6, %v913_v5 }
 0x3c1   : > { %v1032_v12 = vmax.f32 %v1010_v7, 0.0 }
 0x3c2   : > { %v1015_v9 = vpop.f32.mrb[4].mxu1  ;;  %v1033_v14 = vmax.f32 %v1012_v8, 0.0 }
 0x3c3   : > { %v1016_v10 = vadd.f32 %v1015_v9, %v918_v4  ;;  %v1017_v18 = vpop.f32.mrb[5].mxu1 }
 0x3c4   : > { %v1018_v11 = vadd.f32 %v1017_v18, %v918_v4 }
 0x3c5   : > { %v1034_v13 = vmax.f32 %v1016_v10, 0.0 }
 0x3c6   : > { %v1035_v15 = vmax.f32 %v1018_v11, 0.0  ;;  %v1021_v0 = vpop.f32.mrb[6].mxu1 }
 0x3c7   : > { %v1230_v16 = vpack.c.bf16 %v1034_v13, %v1032_v12  ;;  %v1023_v38 = vpop.f32.mrb[7].mxu1  ;;  %v1022_v20 = vadd.f32 %v1021_v0, %v923_v17 }
 0x3c8   : > { %v1228_v19 = vpack.c.bf16 %v1035_v15, %v1033_v14  ;;  %v1024_v22 = vadd.f32 %v1023_v38, %v923_v17 }
 0x3c9   : > { %v1036_v36 = vmax.f32 %v1022_v20, 0.0 }
 0x3ca   : > { %v1027_v23 = vpop.f32.mrb[8].mxu1  ;;  %1229 = vmatprep.subr.bf16.mxu0 %v1228_v19  ;;  %v1037_v28 = vmax.f32 %v1024_v22, 0.0 }
 0x3cb   : > { %v1028_v24 = vadd.f32 %v1027_v23, %v928_v21  ;;  %v1029_v25 = vpop.f32.mrb[9].mxu1  ;;  %1231 = vmatpush1.bf16.msra.mxu0 %v1230_v16 }
 0x3cc   : > { %v1030_v26 = vadd.f32 %v1029_v25, %v928_v21 }
 0x3cd   : > { %v1038_v27 = vmax.f32 %v1028_v24, 0.0 }
 0x3ce   : > { %v1039_v29 = vmax.f32 %v1030_v26, 0.0 }
 0x3cf   : > { %v1234_v31 = vpack.c.bf16 %v1038_v27, %v1036_v36 }
 0x3d0   : > { %v1232_v33 = vpack.c.bf16 %v1039_v29, %v1037_v28 }
 0x3d2   : > { %1233 = vmatprep.subr.bf16.mxu0 %v1232_v33 }
 0x3d3   : > { %1235 = vmatpush1.bf16.msra.mxu0 %v1234_v31 }
 0x3d6   : > { %1220 = vmatmul.mubr.msk.f32.vlgmr.msra.gmra.mrb[4].mxu0 %vm1047_vm2, %v1040_v34 }
 0x4a9   : > { %v1117_v37 = vpop.f32.mrb[4].mxu0 }
 0x4aa   : > { %v1118_v39 = vadd.f32 %v1117_v37, %v1045_v35  ;;  %v1119_v40 = vpop.f32.mrb[5].mxu0 }
 0x4ab   : > { %v1120_v41 = vadd.f32 %v1119_v40, %v1045_v35 }
 0x4ac   : > { %v1122_v42 = vmax.f32 %v1118_v39, 0.0 }
 0x4ad   : > { %v1123_v43 = vmax.f32 %v1120_v41, 0.0 }
 0x4ae   : > { %v1124_v44 = vadd.f32 %v1122_v42, %v1635_v61 }
 0x4af   : > { %v1125_v45 = vadd.f32 %v1123_v43, %v1637_v32 }
 0x4b0   : > { %1126 = vst [vmem:[%s379_s29] sm:$0xff] %v1124_v44 }
 0x4b1   : > { %1127 = vst [vmem:[%s379_s29 + $0x8] sm:$0xff] %v1125_v45 }
 0x4b2   : > { %1317 = shalt.err (!%p1314_p3)
}
 0x4b3   : > { %s1318_s16 = scalar_lea.hbm %s1666_s13, 256  ;;  %s1322_s30 = scalar_lea.hbm %s1719_s11, 512 }
 0x4b4   : > { %p1319_p4 = scmp.ne.s32.totalorder %s1666_s13, %s1318_s16  ;;  %p1323_p9 = scmp.lt.u32.totalorder %s1666_s13, %s1719_s11 }
 0x4b5   : > { %p1324_p10 = scmp.lt.u32.totalorder %s1322_s30, %s1318_s16  ;;  %p1326_p12 = scmp.lt.u32.totalorder %s1318_s16, %s1666_s13 }
 0x4b6   : > { %p1320_p7 = pnand %p1319_p4, %p1483_p5 }
 0x4b7   : > { %p1325_p11 = por %p1324_p10, %p1323_p9 }
 0x4b8   : > { %p1321_p8 = pneg %p1320_p7 }
 0x4b9   : > { %p1327_p13 = por %p1326_p12, %p1325_p11 }
 0x4bb   : > { %p1328_p0 = pnand %p1327_p13, %p1321_p8 }
 0x4bd   : > { %1331 = shalt.err (!%p1328_p0)
}
 0x4be   : > { %1236 = dma.vmem_to_hbm [thread:$0]  (%p1483_p5), %s1668_s25, 256, %s1666_s13, %s1129_s21  }
 0x4bf PF: > { %p1242_p1 = scmp.ge.s32.totalorder %s1366_s20, 2  ;;  %s1155_s0 = sand.u32 1, %s1354_s17  }
 0x4c0   : > { %s1156_s14 = scalar_lea.sflag [#allocation4], %s1155_s0 }
 0x4c1   : > { %p1239_p2 = pnand %p1242_p1, %p1487_p6 }
 0x4c3   : > { %1349 = dma.done.wait (!%p1239_p2), %s1156_s14, 256  }
 0x4c4   : > { %1351 = vsyncadd (!%p1239_p2), %s1156_s14, 4294967040  ;;  %p21_p3 = scmp.ge.s32.totalorder %s1470_s23, 4   ;;  %s1728_s17 = smov %s1358_s18 }
 0x4c5   : > { %s1729_s18 = smov %s1362_s19  ;;  %s1730_s19 = smov %s1481_s26 }
 0x4c6   : > { %s1731_s20 = smov %s1470_s23  ;;  %23 = sbr.rel (!%p21_p3) target bundleno = 5 (0x5), region = 99 }
 0x4cd   :  { %1161 = vsyncpa [#allocation4], 1 }
 0x4ce   :  { %1163 = vsyncpa [#allocation4 + $0x1], 1 }

</bundles_post_ra>
